<compile_context>
chip_gen: v5e
topology: v5e:2x2
jax: 0.10.0
libtpu: 0.0.40
codegen_flags: <defaults>
</compile_context>

<pallas_src>
import jax
import jax.numpy as jnp
from jax.experimental import pallas as pl
from jax.experimental.pallas import tpu as pltpu


def _bn_fused_kernel(x_ref, sb_ref, o_ref):
    """x: (TM, TN); sb: (2, TN) f32 — row 0 = scale, row 1 = shift."""
    x = x_ref[...].astype(jnp.float32)
    o_ref[...] = (x * sb_ref[0:1, :] + sb_ref[1:2, :]).astype(o_ref.dtype)


def _bn_rowwise_kernel(x_ref, sb_ref, o_ref):
    """x: (TM, TN); sb: (TM, 2) f32 — col 0 = scale, col 1 = shift."""
    x = x_ref[...].astype(jnp.float32)
    o_ref[...] = (x * sb_ref[:, 0:1] + sb_ref[:, 1:2]).astype(o_ref.dtype)


def _round_up(a, b):
    return -(-a // b) * b


def _pick_tiles(rows, cols, itemsize, sub, target_bytes):
    """Pick (tm, tn): tm multiple of `sub` (or full), tn multiple of 128 (or full)."""
    # Column (lane) tile.
    if cols % 128 == 0 and cols > 128:
        base_rows = max(1, min(rows, sub))
        tn = max(128, (target_bytes // (base_rows * itemsize)) // 128 * 128)
        tn = min(tn, cols)
        nc = -(-cols // tn)                                  # balance col tiles
        tn = min(cols, _round_up(-(-cols // nc), 128))
    else:
        tn = cols                                            # full extent (legal)

    # Row (sublane) tile.
    if rows <= sub:
        tm = rows
    else:
        tm = max(sub, (target_bytes // (tn * itemsize)) // sub * sub)
        tm = min(tm, rows)
        nr = -(-rows // tm)                                  # balance row tiles
        tm = min(rows, _round_up(-(-rows // nr), sub))

    # v7x megacore: if everything fits in a single grid step but the problem is
    # not tiny, split one axis so both TensorCores / double-buffering get work.
    if tm >= rows and tn >= cols and rows * cols * itemsize >= (2 << 20):
        if cols % 256 == 0:
            tn = cols // 2
        elif rows > 2 * sub:
            tm = (rows // 2) // sub * sub
    return tm, tn


def frozen_batch_norm_2d(x, weight, bias, running_mean, running_var, eps=1e-05):
    """x: (N, C, H, W).  weight/bias/running_mean/running_var: (C,)."""
    N, C, H, W = x.shape
    hw = H * W

    # Fold frozen stats into scale/shift (f32, C elements — tiny wrapper ops).
    scale_c = weight.astype(jnp.float32) * jax.lax.rsqrt(
        running_var.astype(jnp.float32) + eps)
    shift_c = bias.astype(jnp.float32) - running_mean.astype(jnp.float32) * scale_c

    itemsize = jnp.dtype(x.dtype).itemsize
    sub = {1: 32, 2: 16}.get(itemsize, 8)      # sublane packing per dtype width
    target_tile_bytes = 6 << 20                # ~6 MiB of x per grid step

    # Layout selection (see header comment).
    use_rowwise = (hw % 128 == 0) and (hw >= 512)
    if not use_rowwise:
        cols_f = C * hw
        fused_feasible = (cols_f % 128 == 0) or (
            max(1, min(N, sub)) * cols_f * itemsize <= target_tile_bytes)
        if not fused_feasible:
            use_rowwise = True   # lane-sparse fallback: correct, masked stores

    if use_rowwise:
        rows, cols = N * C, hw
        x2d = x.reshape(rows, cols)
        scale_r = jnp.broadcast_to(scale_c[None, :], (N, C)).reshape(rows)
        shift_r = jnp.broadcast_to(shift_c[None, :], (N, C)).reshape(rows)
        sb = jnp.stack([scale_r, shift_r], axis=1)             # (rows, 2) f32
        tm, tn = _pick_tiles(rows, cols, itemsize, sub, target_tile_bytes)
        grid = (pl.cdiv(rows, tm), pl.cdiv(cols, tn))          # cols innermost
        x_spec = pl.BlockSpec((tm, tn), lambda i, j: (i, j))
        sb_spec = pl.BlockSpec((tm, 2), lambda i, j: (i, 0))   # resident over j
        o_spec = pl.BlockSpec((tm, tn), lambda i, j: (i, j))
        kernel = _bn_rowwise_kernel
        sb_tile_bytes = tm * 2 * 4
    else:
        rows, cols = N, C * hw
        x2d = x.reshape(rows, cols)
        scale_row = jnp.broadcast_to(scale_c[:, None], (C, hw)).reshape(cols)
        shift_row = jnp.broadcast_to(shift_c[:, None], (C, hw)).reshape(cols)
        sb = jnp.stack([scale_row, shift_row], axis=0)         # (2, cols) f32
        tm, tn = _pick_tiles(rows, cols, itemsize, sub, target_tile_bytes)
        grid = (pl.cdiv(cols, tn), pl.cdiv(rows, tm))          # rows innermost
        x_spec = pl.BlockSpec((tm, tn), lambda j, i: (i, j))
        sb_spec = pl.BlockSpec((2, tn), lambda j, i: (0, j))   # resident over i
        o_spec = pl.BlockSpec((tm, tn), lambda j, i: (i, j))
        kernel = _bn_fused_kernel
        sb_tile_bytes = 2 * tn * 4

    x_tile_bytes = tm * tn * itemsize
    # Double-buffered x-in + out + sb, plus slack for Mosaic internals.
    vmem_limit = max(32 << 20, 2 * (2 * x_tile_bytes + sb_tile_bytes) + (2 << 20))

    cost = pl.CostEstimate(
        flops=2 * rows * cols,
        transcendentals=0,
        bytes_accessed=2 * rows * cols * itemsize + sb.size * 4,
    )

    out2d = pl.pallas_call(
        kernel,
        out_shape=jax.ShapeDtypeStruct((rows, cols), x.dtype),
        grid_spec=pl.GridSpec(
            grid=grid,
            in_specs=[x_spec, sb_spec],
            out_specs=o_spec,
        ),
        compiler_params=pltpu.CompilerParams(
            dimension_semantics=("parallel", "parallel"),
            vmem_limit_bytes=int(vmem_limit),
        ),
        cost_estimate=cost,
    )(x2d, sb)

    return out2d.reshape(N, C, H, W)


if __name__ == "__main__":
    key = jax.random.PRNGKey(0)
    eps = 1e-05

    def ref_fn(x, weight, bias, running_mean, running_var):
        # Pure-JAX reference mirroring the PyTorch forward exactly.
        scale = (weight * jax.lax.rsqrt(running_var + eps)).reshape(1, -1, 1, 1)
        shift = bias.reshape(1, -1, 1, 1) - running_mean.reshape(1, -1, 1, 1) * scale
        return x * scale + shift

    def make_case(k, shape):
        N, C, H, W = shape
        kx, kw, kb, km, kv = jax.random.split(k, 5)
        x = jax.random.normal(kx, shape, dtype=jnp.float32)
        weight = jnp.ones((C,), jnp.float32) + 0.1 * jax.random.normal(kw, (C,), jnp.float32)
        bias = 0.1 * jax.random.normal(kb, (C,), jnp.float32)
        running_mean = 0.1 * jax.random.normal(km, (C,), jnp.float32)
        running_var = jnp.ones((C,), jnp.float32) + 0.1 * jnp.abs(
            jax.random.normal(kv, (C,), jnp.float32))
        return x, weight, bias, running_mean, running_var

    k1, k2 = jax.random.split(key)

    # Case 1: fused lane-dense path (H*W = 256 -> (N, C*H*W) view).
    args1 = make_case(k1, (2, 4, 16, 16))
    out1 = frozen_batch_norm_2d(*args1)
    jax.block_until_ready(out1)
    assert jnp.allclose(out1, ref_fn(*args1), atol=1e-5, rtol=1e-5), "fused path mismatch"

    # Case 2: row-wise lane-dense path (H*W = 512 -> (N*C, H*W) view).
    args2 = make_case(k2, (2, 8, 32, 16))
    out2 = frozen_batch_norm_2d(*args2)
    jax.block_until_ready(out2)
    assert jnp.allclose(out2, ref_fn(*args2), atol=1e-5, rtol=1e-5), "row-wise path mismatch"

    print("KERNEL_OK")
</pallas_src>

<mosaic_0001>
module attributes {stable_mosaic.version = 11 : i64} {
  func.func @_bn_fused_kernel(%arg0: i32, %arg1: i32, %arg2: memref<2x1024xf32, #tpu.memory_space<vmem>>, %arg3: memref<2x1024xf32, #tpu.memory_space<vmem>>, %arg4: memref<2x1024xf32, #tpu.memory_space<vmem>>) attributes {dimension_semantics = [#tpu.dimension_semantics<parallel>, #tpu.dimension_semantics<parallel>], iteration_bounds = array<i64: 1, 1>, scalar_prefetch = 0 : i64, scratch_operands = 0 : i64, tpu.core_type = #tpu.core_type<tc>, window_params = [{transform_indices = @transform_0, window_bounds = array<i64: 2, 1024>}, {transform_indices = @transform_1, window_bounds = array<i64: 2, 1024>}, {transform_indices = @transform_2, window_bounds = array<i64: 2, 1024>}]} {
    %c0 = arith.constant 0 : index
    %c0_0 = arith.constant 0 : index
    %0 = vector.load %arg2[%c0, %c0_0] : memref<2x1024xf32, #tpu.memory_space<vmem>>, vector<2x1024xf32>
    %c0_1 = arith.constant 0 : index
    %c0_2 = arith.constant 0 : index
    %1 = vector.load %arg3[%c0_1, %c0_2] : memref<2x1024xf32, #tpu.memory_space<vmem>>, vector<1x1024xf32>
    %2 = vector.broadcast %1 : vector<1x1024xf32> to vector<2x1024xf32>
    %3 = arith.mulf %0, %2 : vector<2x1024xf32>
    %c1 = arith.constant 1 : index
    %c0_3 = arith.constant 0 : index
    %4 = vector.load %arg3[%c1, %c0_3] : memref<2x1024xf32, #tpu.memory_space<vmem>>, vector<1x1024xf32>
    %5 = vector.broadcast %4 : vector<1x1024xf32> to vector<2x1024xf32>
    %6 = arith.addf %3, %5 : vector<2x1024xf32>
    %c0_4 = arith.constant 0 : index
    %c0_5 = arith.constant 0 : index
    %7 = vector.load %arg4[%c0_4, %c0_5] : memref<2x1024xf32, #tpu.memory_space<vmem>>, vector<2x1024xf32>
    tpu.vector_store %arg4[%c0_4, %c0_5], %6 {strides = array<i32>} : memref<2x1024xf32, #tpu.memory_space<vmem>>, vector<2x1024xf32>,
    return
  }
  func.func @transform_0(%arg0: i32, %arg1: i32) -> (i32, i32) {
    %c0_i32 = arith.constant 0 : i32
    return %arg1, %arg0 : i32, i32
  }
  func.func @transform_1(%arg0: i32, %arg1: i32) -> (i32, i32) {
    %c0_i32 = arith.constant 0 : i32
    %c0_i32_0 = arith.constant 0 : i32
    return %c0_i32, %arg0 : i32, i32
  }
  func.func @transform_2(%arg0: i32, %arg1: i32) -> (i32, i32) {
    %c0_i32 = arith.constant 0 : i32
    return %arg1, %arg0 : i32, i32
  }
}

</mosaic_0001>

<bundles_post_ra>
// kernel: tpu_custom_call.1
= control target key start
LH: loop header
LB: loop body
LE: loop exit
PB: predicated region body
PF: predicated region fallthrough
CT: control target
= control target key end

     0   :  { %7 = vsyncpa [#allocation3], 0  ;;  %s238_s0 = inlined_call_operand.hbm [shape: f32[2,1024], index: 0, kind: input, shape index: {}]   ;;  %s239_s1 = inlined_call_operand.hbm [shape: f32[2,1024], index: 1, kind: input, shape index: {}]   ;;  %s240_s2 = inlined_call_operand.hbm [shape: f32[2,1024], index: 2, kind: output, shape index: {}]  }
   0x1   :  { %8 = vsyncpa [#allocation6], 0 }
   0x2   :  { %9 = vsyncpa [#allocation4], 0  ;;  %s15_s11 = sshll.u32 %s238_s0, 4  ;;  %s199_s12 = smov [#allocation2]   ;;  %s16_s11 = int_to_ptr.hbm [resolvable:$true] %s15_s11 }
   0x3   :  { %s17_s13 = sshll.u32 %s199_s12, 4  ;;  %s26_s16 = sshll.u32 %s239_s1, 4  ;;  %s18_s13 = int_to_ptr.vmem [resolvable:$true] %s17_s13  ;;  %s27_s16 = int_to_ptr.hbm [resolvable:$true] %s26_s16 }
   0x4   :  { %20 = dma.hbm_to_vmem [thread:$0]  %s16_s11, 256, %s18_s13, [#allocation3]  }
   0x5   :  { %s200_s17 = smov [#allocation5]  }
   0x6   :  { %s28_s18 = sshll.u32 %s200_s17, 4  ;;  %s29_s18 = int_to_ptr.vmem [resolvable:$true] %s28_s18 }
   0x7   :  { %31 = dma.hbm_to_vmem [thread:$0]  %s27_s16, 256, %s29_s18, [#allocation6]  }
   0x8   :  { %193 = dma.done.wait [#allocation3], 256  }
   0x9   :  { %194 = vsyncadd [#allocation3], 4294967040 }
   0xa   :  { %195 = dma.done.wait [#allocation6], 256  }
   0xb   :  { %196 = vsyncadd [#allocation6], 4294967040  ;;  %vm58_vm0 = vcmask 1041408   ;;  %v42_v0 = vld [vmem:[#allocation5] ss:$2 sm:$0xff]  ;;  %vm60_vm1 = vcmask 1045508  }
   0xc   :  { %vm62_vm2 = vcmask 1043456   ;;  %v72_v1 = vld [vmem:[#allocation5 + $0x1] ss:$2 sm:$0xff]  ;;  %v44_v2 = vperm.slane %v42_v0, 0  ;;  %v45_v3 = vperm.slane %v42_v0, 1  ;;  %v46_v4 = vperm.slane %v42_v0, 2 }
   0xd   :  { %v47_v5 = vperm.slane %v42_v0, 3  ;;  %v74_v6 = vperm.slane %v72_v1, 0  ;;  %v75_v7 = vperm.slane %v72_v1, 1  ;;  %v76_v8 = vperm.slane %v72_v1, 2  ;;  %v40_v14 = vld [vmem:[#allocation2] sm:$0xff]  ;;  %v41_v31 = vld [vmem:[#allocation2 + $0x8] sm:$0xff] }
   0xe   :  { %v77_v9 = vperm.slane %v72_v1, 3  ;;  %v52_v10 = vrot.slane %v45_v3, 6  ;;  %v53_v11 = vrot.slane %v46_v4, 4  ;;  %v48_v13 = vperm.slane %v42_v0, 4  ;;  %s201_s0 = smov [#allocation7]   ;;  %s107_s21 = sshll.u32 %s240_s2, 4  ;;  %s108_s21 = int_to_ptr.hbm [resolvable:$true] %s107_s21 }
   0xf   :  { %v54_v12 = vrot.slane %v47_v5, 2  ;;  %v82_v15 = vrot.slane %v75_v7, 6  ;;  %v83_v16 = vrot.slane %v76_v8, 4  ;;  %v49_v18 = vperm.slane %v42_v0, 5  ;;  %s105_s1 = sshll.u32 %s201_s0, 4  ;;  %s106_s1 = int_to_ptr.vmem [resolvable:$true] %s105_s1 }
  0x10   :  { %v84_v17 = vrot.slane %v77_v9, 2  ;;  %v59_v19 = vsel %vm58_vm0, %v44_v2, %v52_v10  ;;  %v50_v21 = vperm.slane %v42_v0, 6  ;;  %v51_v22 = vperm.slane %v42_v0, 7 }
  0x11   :  { %v61_v20 = vsel %vm60_vm1, %v53_v11, %v54_v12  ;;  %v88_v24 = vsel %vm58_vm0, %v74_v6, %v82_v15  ;;  %v55_v26 = vrot.slane %v49_v18, 6  ;;  %v78_v33 = vperm.slane %v72_v1, 4 }
  0x12   :  { %v63_v23 = vsel %vm62_vm2, %v59_v19, %v61_v20  ;;  %v89_v25 = vsel %vm60_vm1, %v83_v16, %v84_v17  ;;  %v56_v29 = vrot.slane %v50_v21, 4  ;;  %v57_v30 = vrot.slane %v51_v22, 2 }
  0x13   :  { %v69_v27 = vmul.f32 %v63_v23, %v40_v14  ;;  %v90_v28 = vsel %vm62_vm2, %v88_v24, %v89_v25  ;;  %v64_v32 = vsel %vm58_vm0, %v48_v13, %v55_v26  ;;  %v79_v34 = vperm.slane %v72_v1, 5 }
  0x14   :  { %v80_v35 = vperm.slane %v72_v1, 6  ;;  %v65_v37 = vsel %vm60_vm1, %v56_v29, %v57_v30  ;;  %v81_v38 = vperm.slane %v72_v1, 7 }
  0x15   :  { %v96_v36 = vadd.f32 %v90_v28, %v69_v27  ;;  %v66_v39 = vsel %vm62_vm2, %v64_v32, %v65_v37  ;;  %v85_v40 = vrot.slane %v79_v34, 6 }
  0x16   :  { %v86_v41 = vrot.slane %v80_v35, 4  ;;  %v70_v42 = vmul.f32 %v66_v39, %v41_v31  ;;  %v87_v43 = vrot.slane %v81_v38, 2 }
  0x17   :  { %98 = vst [vmem:[#allocation7] sm:$0xff] %v96_v36  ;;  %v91_v44 = vsel %vm58_vm0, %v78_v33, %v85_v40 }
  0x18   :  { %v92_v45 = vsel %vm60_vm1, %v86_v41, %v87_v43 }
  0x19   :  { %v93_v46 = vsel %vm62_vm2, %v91_v44, %v92_v45 }
  0x1a   :  { %v97_v47 = vadd.f32 %v93_v46, %v70_v42 }
  0x1c   :  { %99 = vst [vmem:[#allocation7 + $0x8] sm:$0xff] %v97_v47 }
  0x1d   :  { %110 = dma.vmem_to_hbm [thread:$0]  %s106_s1, 256, %s108_s21, [#allocation4]  }
  0x1e   :  { %197 = dma.done.wait [#allocation4], 256  }
  0x1f   :  { %198 = vsyncadd [#allocation4], 4294967040 }
  0x20   :  { %115 = vsyncpa [#allocation3], 1 }
  0x21   :  { %116 = vsyncpa [#allocation6], 1 }
  0x22   :  { %117 = vsyncpa [#allocation4], 1 }

</bundles_post_ra>
